<compile_context>
chip_gen: v7x
topology: tpu7x:2x2x1
jax: 0.10.0
libtpu: 0.0.40
codegen_flags: <defaults>
</compile_context>

<pallas_src>
import math
import jax
import jax.numpy as jnp
from jax.experimental import pallas as pl
from jax.experimental.pallas import tpu as pltpu  # noqa: F401  (CompilerParams if a batch/row grid is re-enabled at scale)

# ---- synthetic GatbertConfig --------------------------------------------------
BATCH = 2
NODES = 8
HIDDEN = 32
NUM_HEADS = 4
HEAD_DIM = HIDDEN // NUM_HEADS
INTERMEDIATE = 128          # 4 * hidden, as in BERT
LN_EPS = 1e-12
REL_DIMS = (3, 3)           # config.rel_dims -> total_rel_dims = 9

# Weight-slab storage dtype.  Set to jnp.bfloat16 on v6e/v7x to halve weight DMA bytes
# (pre-cast at pack time, NOT in-kernel).  Activations / softmax / LayerNorm and the
# QK^T / P@V matmuls stay f32.  Default f32 to match the f32 PyTorch reference numerics.
MATMUL_DTYPE = jnp.float32

# Keep False while inputs are LayerNorm-bounded; set True for unnormalized inputs.
STABLE_SOFTMAX = False

# ---- packed-slab layout constants ----------------------------------------------
LANE = 128
W_Q = 0
W_K = W_Q + HIDDEN
W_V = W_K + HIDDEN
W_O = W_V + HIDDEN
W_I = W_O + HIDDEN
W_D = W_I + HIDDEN
W_ROWS = W_D + INTERMEDIATE          # 288 rows, multiple of 8

V_BQ, V_BK, V_BV, V_BO, V_LN1G, V_LN1B, V_BI, V_BD, V_LN2G, V_LN2B = range(10)
V_ROWS = 16                          # padded to a multiple of 8


def _mm_w(a, w):
    # activation @ weight-slab slice; weights are pre-cast, accumulate in f32
    return jnp.dot(a.astype(w.dtype), w, preferred_element_type=jnp.float32)


def _mm_a(a, b):
    # activation @ activation (QK^T, P@V): always f32 (see correctness notes)
    return jnp.dot(a, b, preferred_element_type=jnp.float32)


def _layer_norm(x, gamma, beta):
    mu = jnp.mean(x, axis=-1, keepdims=True)
    var = jnp.mean((x - mu) ** 2, axis=-1, keepdims=True)
    return (x - mu) * jax.lax.rsqrt(var + LN_EPS) * gamma + beta


def _gelu_tanh(x):
    # TODO(synk): erf-based GELU replaced by tanh approximation (Mosaic-safe).
    c = math.sqrt(2.0 / math.pi)
    return 0.5 * x * (1.0 + jnp.tanh(c * (x + 0.044715 * x * x * x)))


# ---- fused GatbertLayer kernel: whole (B*N, H) problem in ONE grid step --------
def gatbert_layer_kernel(x_ref, bias_ref, w_ref, v_ref, out_ref):
    x = x_ref[...]                      # (BN, H) f32
    mask_bias = bias_ref[...]           # (BN, BN) additive: 0 allowed, -1e9 masked
    w = w_ref[...]                      # (W_ROWS, 128) weight slab (sublane-stacked)
    vs = v_ref[...]                     # (V_ROWS, 128) f32 bias/LN slab

    bq = vs[V_BQ:V_BQ + 1, :HIDDEN]     # 1/sqrt(head_dim) already folded in (with wq)
    bk = vs[V_BK:V_BK + 1, :HIDDEN]
    bv = vs[V_BV:V_BV + 1, :HIDDEN]
    bo = vs[V_BO:V_BO + 1, :HIDDEN]
    ln1_g = vs[V_LN1G:V_LN1G + 1, :HIDDEN]
    ln1_b = vs[V_LN1B:V_LN1B + 1, :HIDDEN]
    bi = vs[V_BI:V_BI + 1, :INTERMEDIATE]
    bd = vs[V_BD:V_BD + 1, :HIDDEN]
    ln2_g = vs[V_LN2G:V_LN2G + 1, :HIDDEN]
    ln2_b = vs[V_LN2B:V_LN2B + 1, :HIDDEN]

    # --- Q/K/V projections: sublane-clean weight slices, three small MXU pushes ---
    q = _mm_w(x, w[W_Q:W_Q + HIDDEN, :HIDDEN]) + bq        # pre-scaled
    k = _mm_w(x, w[W_K:W_K + HIDDEN, :HIDDEN]) + bk
    v = _mm_w(x, w[W_V:W_V + HIDDEN, :HIDDEN]) + bv
    wo = w[W_O:W_O + HIDDEN, :HIDDEN]

    # --- edge-masked multi-head self-attention, output projection fused per head:
    #     ctx @ W_o == sum_h ctx_h @ W_o[h*D:(h+1)*D, :]   -> no concatenate needed.
    kT = k.T                                               # ONE XLU transpose, hoisted
    acc = x + bo                                           # residual + self-output bias
    for h in range(NUM_HEADS):                             # static, unrolled (4 heads)
        sl = slice(h * HEAD_DIM, (h + 1) * HEAD_DIM)
        scores = _mm_a(q[:, sl], kT[sl, :]) + mask_bias    # (BN, BN), scale pre-folded
        if STABLE_SOFTMAX:
            scores = scores - jnp.max(scores, axis=-1, keepdims=True)
        p = jnp.exp(scores)                                # masked -> exp(-1e9) -> 0
        p = p * pl.reciprocal(jnp.sum(p, axis=-1, keepdims=True), approx=True)
        ctx_h = _mm_a(p, v[:, sl])                         # (BN, HEAD_DIM)
        acc = acc + _mm_w(ctx_h, wo[sl, :])                # (BN, H)
    attn_out = _layer_norm(acc, ln1_g, ln1_b)              # BertSelfOutput

    # --- BertIntermediate: dense(H -> I) + GELU ---
    inter = _gelu_tanh(_mm_w(attn_out, w[W_I:W_I + HIDDEN, :INTERMEDIATE]) + bi)

    # --- BertOutput: dense(I -> H) + residual + LayerNorm ---
    ffn = _mm_w(inter, w[W_D:W_D + INTERMEDIATE, :HIDDEN]) + bd
    out = _layer_norm(ffn + attn_out, ln2_g, ln2_b)

    out_ref[...] = out.astype(out_ref.dtype)


# ---- one-time parameter packing (hoisted out of the forward path) ---------------
def pack_params(params):
    scale = jnp.float32(1.0 / math.sqrt(HEAD_DIM))

    wslab = jnp.zeros((W_ROWS, LANE), jnp.float32)
    wslab = wslab.at[W_Q:W_Q + HIDDEN, :HIDDEN].set(params["wq"] * scale)
    wslab = wslab.at[W_K:W_K + HIDDEN, :HIDDEN].set(params["wk"])
    wslab = wslab.at[W_V:W_V + HIDDEN, :HIDDEN].set(params["wv"])
    wslab = wslab.at[W_O:W_O + HIDDEN, :HIDDEN].set(params["wo"])
    wslab = wslab.at[W_I:W_I + HIDDEN, :INTERMEDIATE].set(params["wi"])
    wslab = wslab.at[W_D:W_D + INTERMEDIATE, :HIDDEN].set(params["wd"])
    wslab = wslab.astype(MATMUL_DTYPE)            # pre-cast in HBM (bf16 on v6e/v7x)

    vslab = jnp.zeros((V_ROWS, LANE), jnp.float32)
    vslab = vslab.at[V_BQ, :HIDDEN].set(params["bq"][0] * scale)
    vslab = vslab.at[V_BK, :HIDDEN].set(params["bk"][0])
    vslab = vslab.at[V_BV, :HIDDEN].set(params["bv"][0])
    vslab = vslab.at[V_BO, :HIDDEN].set(params["bo"][0])
    vslab = vslab.at[V_LN1G, :HIDDEN].set(params["ln1_g"][0])
    vslab = vslab.at[V_LN1B, :HIDDEN].set(params["ln1_b"][0])
    vslab = vslab.at[V_BI, :INTERMEDIATE].set(params["bi"][0])
    vslab = vslab.at[V_BD, :HIDDEN].set(params["bd"][0])
    vslab = vslab.at[V_LN2G, :HIDDEN].set(params["ln2_g"][0])
    vslab = vslab.at[V_LN2B, :HIDDEN].set(params["ln2_b"][0])

    return dict(wslab=wslab, vslab=vslab, w_rel=params["w_rel"])


# ---- jitted forward (mask build + pallas_call fuse into one dispatch) -----------
@jax.jit
def _gatbert_layer_jit(node_states, edge_indices, wslab, vslab):
    B, N, H = node_states.shape
    BN = B * N

    # Block-diagonal additive attention bias from sparse COO edges + self loops.
    # Row = source/query node, col = target/key node.
    # TODO(synk): at real BN, pass a compact adjacency (int8/bitmask) and synthesize
    # the bias in-kernel / tile it with a row grid instead of one dense f32 block.
    rows = edge_indices[0] * N + edge_indices[1]
    cols = edge_indices[0] * N + edge_indices[2]
    allowed = jnp.zeros((BN, BN), jnp.float32).at[rows, cols].set(1.0)
    allowed = jnp.maximum(allowed, jnp.eye(BN, dtype=jnp.float32))
    mask_bias = jnp.where(allowed > 0, 0.0, -1e9).astype(jnp.float32)

    x_flat = node_states.reshape(BN, H).astype(jnp.float32)
    operands = (x_flat, mask_bias, wslab, vslab)
    full = lambda a: pl.BlockSpec(a.shape, lambda: (0,) * a.ndim)

    out_flat = pl.pallas_call(
        gatbert_layer_kernel,
        out_shape=jax.ShapeDtypeStruct((BN, H), jnp.float32),
        in_specs=[full(a) for a in operands],
        out_specs=pl.BlockSpec((BN, H), lambda: (0, 0)),
    )(*operands)
    return out_flat.reshape(B, N, H)


def rel_proj(relation_states, w_rel):
    # Flatten -> Linear(no bias) -> Unflatten.  A 9x9 contraction: plain XLA, no kernel.
    lead = relation_states.shape[:-len(REL_DIMS)]
    total = math.prod(REL_DIMS)
    flat = relation_states.reshape(lead + (total,)).astype(jnp.float32)
    return jnp.dot(flat, w_rel).reshape(lead + REL_DIMS)


def gatbert_layer(node_states, edge_indices, node_type_ids, packed,
                  relation_states=None):
    del node_type_ids  # see TODO(synk) in kernel header
    new_node_states = _gatbert_layer_jit(node_states, edge_indices,
                                         packed["wslab"], packed["vslab"])
    # PyTorch `if relation_states` is only well-defined for None; mirror the None path.
    new_relation_states = (rel_proj(relation_states, packed["w_rel"])
                           if relation_states is not None else None)
    return new_node_states, new_relation_states


# ---- deterministic parameter init ----------------------------------------------
def init_params(key):
    ks = jax.random.split(key, 8)
    dense = lambda k, din, dout: (jax.random.normal(k, (din, dout), jnp.float32) * 0.02)
    zeros_row = lambda d: jnp.zeros((1, d), jnp.float32)
    total_rel = math.prod(REL_DIMS)
    return dict(
        wq=dense(ks[0], HIDDEN, HIDDEN), bq=zeros_row(HIDDEN),
        wk=dense(ks[1], HIDDEN, HIDDEN), bk=zeros_row(HIDDEN),
        wv=dense(ks[2], HIDDEN, HIDDEN), bv=zeros_row(HIDDEN),
        wo=dense(ks[3], HIDDEN, HIDDEN), bo=zeros_row(HIDDEN),
        ln1_g=jnp.ones((1, HIDDEN), jnp.float32), ln1_b=zeros_row(HIDDEN),
        wi=dense(ks[4], HIDDEN, INTERMEDIATE), bi=zeros_row(INTERMEDIATE),
        wd=dense(ks[5], INTERMEDIATE, HIDDEN), bd=zeros_row(HIDDEN),
        ln2_g=jnp.ones((1, HIDDEN), jnp.float32), ln2_b=zeros_row(HIDDEN),
        w_rel=dense(ks[6], total_rel, total_rel),
    )


if __name__ == "__main__":
    key = jax.random.PRNGKey(0)
    k_x, k_p, k_eb, k_es, k_et = jax.random.split(key, 5)

    node_states = jax.random.normal(k_x, (BATCH, NODES, HIDDEN), jnp.float32)
    E = 20
    edge_indices = jnp.stack([
        jax.random.randint(k_eb, (E,), 0, BATCH),
        jax.random.randint(k_es, (E,), 0, NODES),
        jax.random.randint(k_et, (E,), 0, NODES),
    ])                                                    # (3, E) sparse COO
    node_type_ids = jnp.zeros((BATCH, NODES), jnp.int32)
    relation_states = None                                # matches reference truthiness path

    params = init_params(k_p)
    packed = pack_params(params)                          # one-time, out of forward path

    new_nodes, new_rels = gatbert_layer(node_states, edge_indices, node_type_ids,
                                        packed, relation_states=relation_states)
    new_nodes = jax.block_until_ready(new_nodes)
    assert new_nodes.shape == (BATCH, NODES, HIDDEN)
    assert new_rels is None
    assert bool(jnp.all(jnp.isfinite(new_nodes)))
    print("KERNEL_OK")
</pallas_src>

<mosaic_0001>
module attributes {stable_mosaic.version = 11 : i64} {
  func.func @gatbert_layer_kernel(%arg0: memref<16x32xf32, #tpu.memory_space<vmem>>, %arg1: memref<16x16xf32, #tpu.memory_space<vmem>>, %arg2: memref<288x128xf32, #tpu.memory_space<vmem>>, %arg3: memref<16x128xf32, #tpu.memory_space<vmem>>, %arg4: memref<16x32xf32, #tpu.memory_space<vmem>>) attributes {dimension_semantics = [], scalar_prefetch = 0 : i64, scratch_operands = 0 : i64, tpu.core_type = #tpu.core_type<tc>} {
    %c0 = arith.constant 0 : index
    %c0_0 = arith.constant 0 : index
    %0 = vector.load %arg0[%c0, %c0_0] : memref<16x32xf32, #tpu.memory_space<vmem>>, vector<16x32xf32>
    %c0_1 = arith.constant 0 : index
    %c0_2 = arith.constant 0 : index
    %1 = vector.load %arg1[%c0_1, %c0_2] : memref<16x16xf32, #tpu.memory_space<vmem>>, vector<16x16xf32>
    %c0_3 = arith.constant 0 : index
    %c0_4 = arith.constant 0 : index
    %2 = vector.load %arg2[%c0_3, %c0_4] : memref<288x128xf32, #tpu.memory_space<vmem>>, vector<288x128xf32>
    %c0_5 = arith.constant 0 : index
    %c0_6 = arith.constant 0 : index
    %3 = vector.load %arg3[%c0_5, %c0_6] : memref<16x128xf32, #tpu.memory_space<vmem>>, vector<16x128xf32>
    %4 = vector.extract_strided_slice %3 {offsets = [0, 0], sizes = [1, 32], strides = [1, 1]} : vector<16x128xf32> to vector<1x32xf32>
    %5 = vector.extract_strided_slice %3 {offsets = [1, 0], sizes = [1, 32], strides = [1, 1]} : vector<16x128xf32> to vector<1x32xf32>
    %6 = vector.extract_strided_slice %3 {offsets = [2, 0], sizes = [1, 32], strides = [1, 1]} : vector<16x128xf32> to vector<1x32xf32>
    %7 = vector.extract_strided_slice %3 {offsets = [3, 0], sizes = [1, 32], strides = [1, 1]} : vector<16x128xf32> to vector<1x32xf32>
    %8 = vector.extract_strided_slice %3 {offsets = [4, 0], sizes = [1, 32], strides = [1, 1]} : vector<16x128xf32> to vector<1x32xf32>
    %9 = vector.extract_strided_slice %3 {offsets = [5, 0], sizes = [1, 32], strides = [1, 1]} : vector<16x128xf32> to vector<1x32xf32>
    %10 = vector.extract_strided_slice %3 {offsets = [6, 0], sizes = [1, 128], strides = [1, 1]} : vector<16x128xf32> to vector<1x128xf32>
    %11 = vector.extract_strided_slice %3 {offsets = [7, 0], sizes = [1, 32], strides = [1, 1]} : vector<16x128xf32> to vector<1x32xf32>
    %12 = vector.extract_strided_slice %3 {offsets = [8, 0], sizes = [1, 32], strides = [1, 1]} : vector<16x128xf32> to vector<1x32xf32>
    %13 = vector.extract_strided_slice %3 {offsets = [9, 0], sizes = [1, 32], strides = [1, 1]} : vector<16x128xf32> to vector<1x32xf32>
    %14 = vector.extract_strided_slice %2 {offsets = [0, 0], sizes = [32, 32], strides = [1, 1]} : vector<288x128xf32> to vector<32x32xf32>
    %cst = arith.constant dense<0.000000e+00> : vector<16x32xf32>
    %15 = tpu.matmul %0, %14, %cst {dimension_numbers = #tpu.dot_dimension_numbers<[1], [0], [0], [1], [0, 0, 1, 1], [], []>} : vector<16x32xf32>, vector<32x32xf32>, vector<16x32xf32> -> vector<16x32xf32>
    %16 = vector.broadcast %4 : vector<1x32xf32> to vector<16x32xf32>
    %17 = arith.addf %15, %16 : vector<16x32xf32>
    %18 = vector.extract_strided_slice %2 {offsets = [32, 0], sizes = [32, 32], strides = [1, 1]} : vector<288x128xf32> to vector<32x32xf32>
    %cst_7 = arith.constant dense<0.000000e+00> : vector<16x32xf32>
    %19 = tpu.matmul %0, %18, %cst_7 {dimension_numbers = #tpu.dot_dimension_numbers<[1], [0], [0], [1], [0, 0, 1, 1], [], []>} : vector<16x32xf32>, vector<32x32xf32>, vector<16x32xf32> -> vector<16x32xf32>
    %20 = vector.broadcast %5 : vector<1x32xf32> to vector<16x32xf32>
    %21 = arith.addf %19, %20 : vector<16x32xf32>
    %22 = vector.extract_strided_slice %2 {offsets = [64, 0], sizes = [32, 32], strides = [1, 1]} : vector<288x128xf32> to vector<32x32xf32>
    %cst_8 = arith.constant dense<0.000000e+00> : vector<16x32xf32>
    %23 = tpu.matmul %0, %22, %cst_8 {dimension_numbers = #tpu.dot_dimension_numbers<[1], [0], [0], [1], [0, 0, 1, 1], [], []>} : vector<16x32xf32>, vector<32x32xf32>, vector<16x32xf32> -> vector<16x32xf32>
    %24 = vector.broadcast %6 : vector<1x32xf32> to vector<16x32xf32>
    %25 = arith.addf %23, %24 : vector<16x32xf32>
    %26 = vector.extract_strided_slice %2 {offsets = [96, 0], sizes = [32, 32], strides = [1, 1]} : vector<288x128xf32> to vector<32x32xf32>
    %27 = tpu.transpose %21, [1, 0] : vector<16x32xf32> -> vector<32x16xf32>
    %28 = vector.broadcast %7 : vector<1x32xf32> to vector<16x32xf32>
    %29 = arith.addf %0, %28 : vector<16x32xf32>
    %30 = vector.extract_strided_slice %17 {offsets = [0, 0], sizes = [16, 8], strides = [1, 1]} : vector<16x32xf32> to vector<16x8xf32>
    %31 = vector.extract_strided_slice %27 {offsets = [0, 0], sizes = [8, 16], strides = [1, 1]} : vector<32x16xf32> to vector<8x16xf32>
    %cst_9 = arith.constant dense<0.000000e+00> : vector<16x16xf32>
    %32 = tpu.matmul %30, %31, %cst_9 {dimension_numbers = #tpu.dot_dimension_numbers<[1], [0], [0], [1], [0, 0, 1, 1], [], []>} : vector<16x8xf32>, vector<8x16xf32>, vector<16x16xf32> -> vector<16x16xf32>
    %33 = arith.addf %32, %1 : vector<16x16xf32>
    %34 = math.exp %33 : vector<16x16xf32>
    %cst_10 = arith.constant dense<0.000000e+00> : vector<16xf32>
    %35 = vector.multi_reduction <add>, %34, %cst_10 [1] : vector<16x16xf32> to vector<16xf32>
    %36 = vector.shape_cast %35 : vector<16xf32> to vector<16x1xf32>
    %37 = tpu.reciprocal %36 {approx = true} : vector<16x1xf32> -> vector<16x1xf32>
    %38 = vector.broadcast %37 : vector<16x1xf32> to vector<16x16xf32>
    %39 = arith.mulf %34, %38 : vector<16x16xf32>
    %40 = vector.extract_strided_slice %25 {offsets = [0, 0], sizes = [16, 8], strides = [1, 1]} : vector<16x32xf32> to vector<16x8xf32>
    %cst_11 = arith.constant dense<0.000000e+00> : vector<16x8xf32>
    %41 = tpu.matmul %39, %40, %cst_11 {dimension_numbers = #tpu.dot_dimension_numbers<[1], [0], [0], [1], [0, 0, 1, 1], [], []>} : vector<16x16xf32>, vector<16x8xf32>, vector<16x8xf32> -> vector<16x8xf32>
    %42 = vector.extract_strided_slice %26 {offsets = [0, 0], sizes = [8, 32], strides = [1, 1]} : vector<32x32xf32> to vector<8x32xf32>
    %cst_12 = arith.constant dense<0.000000e+00> : vector<16x32xf32>
    %43 = tpu.matmul %41, %42, %cst_12 {dimension_numbers = #tpu.dot_dimension_numbers<[1], [0], [0], [1], [0, 0, 1, 1], [], []>} : vector<16x8xf32>, vector<8x32xf32>, vector<16x32xf32> -> vector<16x32xf32>
    %44 = arith.addf %29, %43 : vector<16x32xf32>
    %45 = vector.extract_strided_slice %17 {offsets = [0, 8], sizes = [16, 8], strides = [1, 1]} : vector<16x32xf32> to vector<16x8xf32>
    %46 = vector.extract_strided_slice %27 {offsets = [8, 0], sizes = [8, 16], strides = [1, 1]} : vector<32x16xf32> to vector<8x16xf32>
    %cst_13 = arith.constant dense<0.000000e+00> : vector<16x16xf32>
    %47 = tpu.matmul %45, %46, %cst_13 {dimension_numbers = #tpu.dot_dimension_numbers<[1], [0], [0], [1], [0, 0, 1, 1], [], []>} : vector<16x8xf32>, vector<8x16xf32>, vector<16x16xf32> -> vector<16x16xf32>
    %48 = arith.addf %47, %1 : vector<16x16xf32>
    %49 = math.exp %48 : vector<16x16xf32>
    %cst_14 = arith.constant dense<0.000000e+00> : vector<16xf32>
    %50 = vector.multi_reduction <add>, %49, %cst_14 [1] : vector<16x16xf32> to vector<16xf32>
    %51 = vector.shape_cast %50 : vector<16xf32> to vector<16x1xf32>
    %52 = tpu.reciprocal %51 {approx = true} : vector<16x1xf32> -> vector<16x1xf32>
    %53 = vector.broadcast %52 : vector<16x1xf32> to vector<16x16xf32>
    %54 = arith.mulf %49, %53 : vector<16x16xf32>
    %55 = vector.extract_strided_slice %25 {offsets = [0, 8], sizes = [16, 8], strides = [1, 1]} : vector<16x32xf32> to vector<16x8xf32>
    %cst_15 = arith.constant dense<0.000000e+00> : vector<16x8xf32>
    %56 = tpu.matmul %54, %55, %cst_15 {dimension_numbers = #tpu.dot_dimension_numbers<[1], [0], [0], [1], [0, 0, 1, 1], [], []>} : vector<16x16xf32>, vector<16x8xf32>, vector<16x8xf32> -> vector<16x8xf32>
    %57 = vector.extract_strided_slice %26 {offsets = [8, 0], sizes = [8, 32], strides = [1, 1]} : vector<32x32xf32> to vector<8x32xf32>
    %cst_16 = arith.constant dense<0.000000e+00> : vector<16x32xf32>
    %58 = tpu.matmul %56, %57, %cst_16 {dimension_numbers = #tpu.dot_dimension_numbers<[1], [0], [0], [1], [0, 0, 1, 1], [], []>} : vector<16x8xf32>, vector<8x32xf32>, vector<16x32xf32> -> vector<16x32xf32>
    %59 = arith.addf %44, %58 : vector<16x32xf32>
    %60 = vector.extract_strided_slice %17 {offsets = [0, 16], sizes = [16, 8], strides = [1, 1]} : vector<16x32xf32> to vector<16x8xf32>
    %61 = vector.extract_strided_slice %27 {offsets = [16, 0], sizes = [8, 16], strides = [1, 1]} : vector<32x16xf32> to vector<8x16xf32>
    %cst_17 = arith.constant dense<0.000000e+00> : vector<16x16xf32>
    %62 = tpu.matmul %60, %61, %cst_17 {dimension_numbers = #tpu.dot_dimension_numbers<[1], [0], [0], [1], [0, 0, 1, 1], [], []>} : vector<16x8xf32>, vector<8x16xf32>, vector<16x16xf32> -> vector<16x16xf32>
    %63 = arith.addf %62, %1 : vector<16x16xf32>
    %64 = math.exp %63 : vector<16x16xf32>
    %cst_18 = arith.constant dense<0.000000e+00> : vector<16xf32>
    %65 = vector.multi_reduction <add>, %64, %cst_18 [1] : vector<16x16xf32> to vector<16xf32>
    %66 = vector.shape_cast %65 : vector<16xf32> to vector<16x1xf32>
    %67 = tpu.reciprocal %66 {approx = true} : vector<16x1xf32> -> vector<16x1xf32>
    %68 = vector.broadcast %67 : vector<16x1xf32> to vector<16x16xf32>
    %69 = arith.mulf %64, %68 : vector<16x16xf32>
    %70 = vector.extract_strided_slice %25 {offsets = [0, 16], sizes = [16, 8], strides = [1, 1]} : vector<16x32xf32> to vector<16x8xf32>
    %cst_19 = arith.constant dense<0.000000e+00> : vector<16x8xf32>
    %71 = tpu.matmul %69, %70, %cst_19 {dimension_numbers = #tpu.dot_dimension_numbers<[1], [0], [0], [1], [0, 0, 1, 1], [], []>} : vector<16x16xf32>, vector<16x8xf32>, vector<16x8xf32> -> vector<16x8xf32>
    %72 = vector.extract_strided_slice %26 {offsets = [16, 0], sizes = [8, 32], strides = [1, 1]} : vector<32x32xf32> to vector<8x32xf32>
    %cst_20 = arith.constant dense<0.000000e+00> : vector<16x32xf32>
    %73 = tpu.matmul %71, %72, %cst_20 {dimension_numbers = #tpu.dot_dimension_numbers<[1], [0], [0], [1], [0, 0, 1, 1], [], []>} : vector<16x8xf32>, vector<8x32xf32>, vector<16x32xf32> -> vector<16x32xf32>
    %74 = arith.addf %59, %73 : vector<16x32xf32>
    %75 = vector.extract_strided_slice %17 {offsets = [0, 24], sizes = [16, 8], strides = [1, 1]} : vector<16x32xf32> to vector<16x8xf32>
    %76 = vector.extract_strided_slice %27 {offsets = [24, 0], sizes = [8, 16], strides = [1, 1]} : vector<32x16xf32> to vector<8x16xf32>
    %cst_21 = arith.constant dense<0.000000e+00> : vector<16x16xf32>
    %77 = tpu.matmul %75, %76, %cst_21 {dimension_numbers = #tpu.dot_dimension_numbers<[1], [0], [0], [1], [0, 0, 1, 1], [], []>} : vector<16x8xf32>, vector<8x16xf32>, vector<16x16xf32> -> vector<16x16xf32>
    %78 = arith.addf %77, %1 : vector<16x16xf32>
    %79 = math.exp %78 : vector<16x16xf32>
    %cst_22 = arith.constant dense<0.000000e+00> : vector<16xf32>
    %80 = vector.multi_reduction <add>, %79, %cst_22 [1] : vector<16x16xf32> to vector<16xf32>
    %81 = vector.shape_cast %80 : vector<16xf32> to vector<16x1xf32>
    %82 = tpu.reciprocal %81 {approx = true} : vector<16x1xf32> -> vector<16x1xf32>
    %83 = vector.broadcast %82 : vector<16x1xf32> to vector<16x16xf32>
    %84 = arith.mulf %79, %83 : vector<16x16xf32>
    %85 = vector.extract_strided_slice %25 {offsets = [0, 24], sizes = [16, 8], strides = [1, 1]} : vector<16x32xf32> to vector<16x8xf32>
    %cst_23 = arith.constant dense<0.000000e+00> : vector<16x8xf32>
    %86 = tpu.matmul %84, %85, %cst_23 {dimension_numbers = #tpu.dot_dimension_numbers<[1], [0], [0], [1], [0, 0, 1, 1], [], []>} : vector<16x16xf32>, vector<16x8xf32>, vector<16x8xf32> -> vector<16x8xf32>
    %87 = vector.extract_strided_slice %26 {offsets = [24, 0], sizes = [8, 32], strides = [1, 1]} : vector<32x32xf32> to vector<8x32xf32>
    %cst_24 = arith.constant dense<0.000000e+00> : vector<16x32xf32>
    %88 = tpu.matmul %86, %87, %cst_24 {dimension_numbers = #tpu.dot_dimension_numbers<[1], [0], [0], [1], [0, 0, 1, 1], [], []>} : vector<16x8xf32>, vector<8x32xf32>, vector<16x32xf32> -> vector<16x32xf32>
    %89 = arith.addf %74, %88 : vector<16x32xf32>
    %cst_25 = arith.constant dense<0.000000e+00> : vector<16xf32>
    %90 = vector.multi_reduction <add>, %89, %cst_25 [1] : vector<16x32xf32> to vector<16xf32>
    %91 = vector.shape_cast %90 : vector<16xf32> to vector<16x1xf32>
    %cst_26 = arith.constant 3.200000e+01 : f32
    %92 = vector.broadcast %cst_26 : f32 to vector<16x1xf32>
    %93 = arith.divf %91, %92 : vector<16x1xf32>
    %94 = vector.broadcast %93 : vector<16x1xf32> to vector<16x32xf32>
    %95 = arith.subf %89, %94 : vector<16x32xf32>
    %96 = arith.mulf %95, %95 : vector<16x32xf32>
    %cst_27 = arith.constant dense<0.000000e+00> : vector<16xf32>
    %97 = vector.multi_reduction <add>, %96, %cst_27 [1] : vector<16x32xf32> to vector<16xf32>
    %98 = vector.shape_cast %97 : vector<16xf32> to vector<16x1xf32>
    %cst_28 = arith.constant 3.200000e+01 : f32
    %99 = vector.broadcast %cst_28 : f32 to vector<16x1xf32>
    %100 = arith.divf %98, %99 : vector<16x1xf32>
    %101 = vector.broadcast %93 : vector<16x1xf32> to vector<16x32xf32>
    %102 = arith.subf %89, %101 : vector<16x32xf32>
    %cst_29 = arith.constant 9.99999996E-13 : f32
    %103 = vector.broadcast %cst_29 : f32 to vector<16x1xf32>
    %104 = arith.addf %100, %103 : vector<16x1xf32>
    %105 = math.rsqrt %104 : vector<16x1xf32>
    %106 = vector.broadcast %105 : vector<16x1xf32> to vector<16x32xf32>
    %107 = arith.mulf %102, %106 : vector<16x32xf32>
    %108 = vector.broadcast %8 : vector<1x32xf32> to vector<16x32xf32>
    %109 = arith.mulf %107, %108 : vector<16x32xf32>
    %110 = vector.broadcast %9 : vector<1x32xf32> to vector<16x32xf32>
    %111 = arith.addf %109, %110 : vector<16x32xf32>
    %112 = vector.extract_strided_slice %2 {offsets = [128, 0], sizes = [32, 128], strides = [1, 1]} : vector<288x128xf32> to vector<32x128xf32>
    %cst_30 = arith.constant dense<0.000000e+00> : vector<16x128xf32>
    %113 = tpu.matmul %111, %112, %cst_30 {dimension_numbers = #tpu.dot_dimension_numbers<[1], [0], [0], [1], [0, 0, 1, 1], [], []>} : vector<16x32xf32>, vector<32x128xf32>, vector<16x128xf32> -> vector<16x128xf32>
    %114 = vector.broadcast %10 : vector<1x128xf32> to vector<16x128xf32>
    %115 = arith.addf %113, %114 : vector<16x128xf32>
    %cst_31 = arith.constant 5.000000e-01 : f32
    %116 = vector.broadcast %cst_31 : f32 to vector<16x128xf32>
    %117 = arith.mulf %116, %115 : vector<16x128xf32>
    %cst_32 = arith.constant 4.471500e-02 : f32
    %118 = vector.broadcast %cst_32 : f32 to vector<16x128xf32>
    %119 = arith.mulf %118, %115 : vector<16x128xf32>
    %120 = arith.mulf %119, %115 : vector<16x128xf32>
    %121 = arith.mulf %120, %115 : vector<16x128xf32>
    %122 = arith.addf %115, %121 : vector<16x128xf32>
    %cst_33 = arith.constant 0.797884583 : f32
    %123 = vector.broadcast %cst_33 : f32 to vector<16x128xf32>
    %124 = arith.mulf %123, %122 : vector<16x128xf32>
    %125 = math.tanh %124 : vector<16x128xf32>
    %cst_34 = arith.constant 1.000000e+00 : f32
    %126 = vector.broadcast %cst_34 : f32 to vector<16x128xf32>
    %127 = arith.addf %126, %125 : vector<16x128xf32>
    %128 = arith.mulf %117, %127 : vector<16x128xf32>
    %129 = vector.extract_strided_slice %2 {offsets = [160, 0], sizes = [128, 32], strides = [1, 1]} : vector<288x128xf32> to vector<128x32xf32>
    %cst_35 = arith.constant dense<0.000000e+00> : vector<16x32xf32>
    %130 = tpu.matmul %128, %129, %cst_35 {dimension_numbers = #tpu.dot_dimension_numbers<[1], [0], [0], [1], [0, 0, 1, 1], [], []>} : vector<16x128xf32>, vector<128x32xf32>, vector<16x32xf32> -> vector<16x32xf32>
    %131 = vector.broadcast %11 : vector<1x32xf32> to vector<16x32xf32>
    %132 = arith.addf %130, %131 : vector<16x32xf32>
    %133 = arith.addf %132, %111 : vector<16x32xf32>
    %cst_36 = arith.constant dense<0.000000e+00> : vector<16xf32>
    %134 = vector.multi_reduction <add>, %133, %cst_36 [1] : vector<16x32xf32> to vector<16xf32>
    %135 = vector.shape_cast %134 : vector<16xf32> to vector<16x1xf32>
    %cst_37 = arith.constant 3.200000e+01 : f32
    %136 = vector.broadcast %cst_37 : f32 to vector<16x1xf32>
    %137 = arith.divf %135, %136 : vector<16x1xf32>
    %138 = vector.broadcast %137 : vector<16x1xf32> to vector<16x32xf32>
    %139 = arith.subf %133, %138 : vector<16x32xf32>
    %140 = arith.mulf %139, %139 : vector<16x32xf32>
    %cst_38 = arith.constant dense<0.000000e+00> : vector<16xf32>
    %141 = vector.multi_reduction <add>, %140, %cst_38 [1] : vector<16x32xf32> to vector<16xf32>
    %142 = vector.shape_cast %141 : vector<16xf32> to vector<16x1xf32>
    %cst_39 = arith.constant 3.200000e+01 : f32
    %143 = vector.broadcast %cst_39 : f32 to vector<16x1xf32>
    %144 = arith.divf %142, %143 : vector<16x1xf32>
    %145 = vector.broadcast %137 : vector<16x1xf32> to vector<16x32xf32>
    %146 = arith.subf %133, %145 : vector<16x32xf32>
    %cst_40 = arith.constant 9.99999996E-13 : f32
    %147 = vector.broadcast %cst_40 : f32 to vector<16x1xf32>
    %148 = arith.addf %144, %147 : vector<16x1xf32>
    %149 = math.rsqrt %148 : vector<16x1xf32>
    %150 = vector.broadcast %149 : vector<16x1xf32> to vector<16x32xf32>
    %151 = arith.mulf %146, %150 : vector<16x32xf32>
    %152 = vector.broadcast %12 : vector<1x32xf32> to vector<16x32xf32>
    %153 = arith.mulf %151, %152 : vector<16x32xf32>
    %154 = vector.broadcast %13 : vector<1x32xf32> to vector<16x32xf32>
    %155 = arith.addf %153, %154 : vector<16x32xf32>
    %c0_41 = arith.constant 0 : index
    %c0_42 = arith.constant 0 : index
    %156 = vector.load %arg4[%c0_41, %c0_42] : memref<16x32xf32, #tpu.memory_space<vmem>>, vector<16x32xf32>
    tpu.vector_store %arg4[%c0_41, %c0_42], %155 {strides = array<i32>} : memref<16x32xf32, #tpu.memory_space<vmem>>, vector<16x32xf32>,
    return
  }
}

</mosaic_0001>

<bundles_post_ra>
// kernel: _gatbert_layer_jit.1
= control target key start
LH: loop header
LB: loop body
LE: loop exit
PB: predicated region body
PF: predicated region fallthrough
CT: control target
= control target key end

     0   :  { %vm64_vm0 = vcmask 261120   ;;  %s2521_s0 = inlined_call_operand.vmem [shape: f32[16,32], index: 0, kind: input, shape index: {}]   ;;  %s2522_s1 = inlined_call_operand.vmem [shape: f32[16,16], index: 1, kind: input, shape index: {}]   ;;  %s2523_s2 = inlined_call_operand.vmem [shape: f32[288,128], index: 2, kind: input, shape index: {}]   ;;  %s2524_s3 = inlined_call_operand.vmem [shape: f32[16,128], index: 3, kind: input, shape index: {}]   ;;  %s2525_s4 = inlined_call_operand.hbm [shape: f32[16,32], index: 4, kind: output, shape index: {}]  }
   0x1   :  { %v22_v0 = vld [vmem:[%s2523_s2] sm:$0xff]  ;;  %v23_v1 = vld [vmem:[%s2523_s2 + $0x8] sm:$0xff]  ;;  %v24_v2 = vld [vmem:[%s2523_s2 + $0x10] sm:$0xff] }
   0x2   :  { %v1964_v3 = vpack.c.bf16 %v23_v1, %v22_v0  ;;  %v25_v4 = vld [vmem:[%s2523_s2 + $0x18] sm:$0xff]  ;;  %v2226_v5 = vld [vmem:[%s2521_s0] sm:$0xff]  ;;  %v27_v8 = vld [vmem:[%s2523_s2 + $0x28] sm:$0xff] }
   0x3   :  { %v1968_v6 = vpack.c.bf16 %v25_v4, %v24_v2  ;;  %1817 = vmatprep.mubr.msk.f32.mxu0 %vm64_vm0, %v2226_v5  ;;  %v26_v7 = vld [vmem:[%s2523_s2 + $0x20] sm:$0xff] }
   0x4   :  { %1965 = vmatprep.subr.bf16.mxu0 %v1964_v3 }
   0x5   :  { %1967 = vmatpush3.bf16.msra.mxu0 %v1964_v3 }
   0x6   :  { %9 = vsyncpa [#allocation3], 0  ;;  %1969 = vmatprep.subr.bf16.mxu0 %v1968_v6  ;;  %v1972_v9 = vpack.c.bf16 %v27_v8, %v26_v7  ;;  %v28_v10 = vld [vmem:[%s2523_s2 + $0x30] sm:$0xff]  ;;  %v29_v11 = vld [vmem:[%s2523_s2 + $0x38] sm:$0xff]  ;;  %v60_v14 = vlaneseq  ;;  %vm310_vm1 = vcmask 64512   ;;  %s2180_s10 = smov 120  }
   0x7   :  { %v2245_v12 = vld [vmem:[%s2521_s0 + $0x8] sm:$0xff]  ;;  %v1976_v13 = vpack.c.bf16 %v29_v11, %v28_v10  ;;  %v2261_v17 = vld [vmem:[%s2524_s3] sm:$0xff]  ;;  %vm2276_vm2 = vmpackc.low %vm310_vm1, %vm310_vm1  ;;  %s2181_s19 = smov 112   ;;  %vm402_vm3 = vcmask 130048   ;;  %s2182_s25 = smov 104  }
   0x8   :  { %v2255_v15 = vshrl.u32 %v60_v14, 7  ;;  %v30_v31 = vld [vmem:[%s2523_s2 + $0x40] sm:$0xff]  ;;  %v31_v32 = vld [vmem:[%s2523_s2 + $0x48] sm:$0xff]  ;;  %v32_v33 = vld [vmem:[%s2523_s2 + $0x50] sm:$0xff]  ;;  %s2183_s18 = smov [#allocation2]  }
   0x9   :  { %1971 = vmatpush3.bf16.msra.mxu0 %v1968_v6  ;;  %v1980_v34 = vpack.c.bf16 %v31_v32, %v30_v31  ;;  %v33_v35 = vld [vmem:[%s2523_s2 + $0x58] sm:$0xff]  ;;  %v2317_v38 = vld [vmem:[%s2522_s1 + $0x8] sm:$0xff]  ;;  %v2322_v39 = vld [vmem:[%s2522_s1] sm:$0xff] }
   0xa   :  { %1973 = vmatprep.subr.bf16.mxu0 %v1972_v9  ;;  %v62_v16 = vsub.s32 0, %v2255_v15  ;;  %v148_v21 = vsub.s32 1, %v2255_v15  ;;  %v1984_v36 = vpack.c.bf16 %v33_v35, %v32_v33  ;;  %v227_v50 = vsub.s32 2, %v2255_v15  ;;  %v34_v58 = vld [vmem:[%s2523_s2 + $0x60] sm:$0xff] }
   0xc   :  { %1818 = vmatmul.mubr.msk.f32.vlgmr.msra.gmra.mrb[0].mxu0 %vm64_vm0, %v2245_v12  ;;  %v63_v18 = vrot.slane %v2261_v17, %v62_v16  ;;  %v149_v23 = vrot.slane %v2261_v17, %v148_v21  ;;  %v228_v51 = vrot.slane %v2261_v17, %v227_v50 }
   0xd   :  { %1975 = vmatpush3.bf16.msra.mxu0 %v1972_v9  ;;  %1828 = vmatprep.mubr.msk.f32.mxu0 %vm64_vm0, %v2226_v5 }
   0xe   :  { %1977 = vmatprep.subr.bf16.mxu0 %v1976_v13 }
  0x11   :  { %1979 = vmatpush3.bf16.msra.mxu0 %v1976_v13 }
  0x12   :  { %1981 = vmatprep.subr.bf16.mxu0 %v1980_v34 }
  0x14   :  { %1829 = vmatmul.mubr.msk.f32.vlgmr.msra.gmra.mrb[2].mxu0 %vm64_vm0, %v2245_v12 }
  0x15   :  { %1839 = vmatprep.mubr.msk.f32.mxu0 %vm64_vm0, %v2226_v5  ;;  %1983 = vmatpush3.bf16.msra.mxu0 %v1980_v34 }
  0x16   :  { %1985 = vmatprep.subr.bf16.mxu0 %v1984_v36 }
  0x19   :  { %1987 = vmatpush3.bf16.msra.mxu0 %v1984_v36 }
  0x1c   :  { %1840 = vmatmul.mubr.msk.f32.vlgmr.msra.gmra.mrb[4].mxu0 %vm64_vm0, %v2245_v12 }
  0xdf   :  { %v1819_v19 = vpop.f32.mrb[0].mxu0 }
  0xe0   :  { %v137_v20 = vpop.f32.mrb[1].mxu0  ;;  %v2302_v37 = vadd.f32 %v1819_v19, %v63_v18 }
  0xe1   :  { %v2267_v22 = vadd.f32 %v137_v20, %v63_v18 }
  0xe3   :  { %1846 = vmatprep.mubr.msk.f32.mxu1 %vm310_vm1, %v2267_v22 }
  0xe7   :  { %v1830_v24 = vpop.f32.mrb[2].mxu0 }
  0xe8   :  { %v222_v25 = vadd.f32 %v1830_v24, %v149_v23  ;;  %v216_v26 = vpop.f32.mrb[3].mxu0 }
  0xe9   :  { %v217_v27 = vadd.f32 %v216_v26, %v149_v23 }
  0xeb   :  { %v2280_v29 = vpack.i.bf16 %v222_v25, %v217_v27  ;;  %v1988_v30 = vpack.c.bf16 %v222_v25, %v217_v27 }
  0xed   :  { %2083 = vrot.lane.b32.xlu1 %v2280_v29, %s2180_s10  ;;  %1990 = vmatprep.subr.msk.bf16.mxu1 %vm2276_vm2, %v1988_v30 }
  0xee   :  { %1993 = vmatpush3.bf16.xpose.msk.msra.mxu1 %vm2276_vm2, %v1988_v30 }
  0xef   :  { %v1841_v52 = vpop.f32.mrb[4].mxu0 }
  0xf0   :  { %v295_v53 = vpop.f32.mrb[5].mxu0  ;;  %v301_v54 = vadd.f32 %v1841_v52, %v228_v51 }
  0xf1   :  { %577 = vrot.lane.b32.xlu1 %v2267_v22, %s2180_s10  ;;  %v296_v55 = vadd.f32 %v295_v53, %v228_v51 }
  0xf3   :  { %v1994_v56 = vpack.c.bf16 %v301_v54, %v296_v55  ;;  %v2330_v57 = vpack.i.bf16 %v301_v54, %v296_v55 }
  0xf5   :  { %2088 = vrot.lane.b32.xlu1 %v2280_v29, %s2181_s19  ;;  %1847 = vmatmul.mubr.msk.f32.vlgmr.msra.gmra.mrb[0].mxu1 %vm310_vm1, %v2302_v37 }
  0xf6   :  { %1995 = vmatprep.subr.bf16.mxu0 %v1994_v56 }
  0xf7   :  { %1997 = vmatpush3.bf16.msra.mxu0 %v1994_v56 }
  0xf8   :  { %1856 = vmatprep.subr.mxu0 %v34_v58 }
  0xf9   :  { %854 = vrot.lane.b32.xlu1 %v2267_v22, %s2181_s19 }
  0xfd   :  { %856 = vrot.lane.b32.xlu1 %v2302_v37, %s2181_s19 }
 0x15f   :  { %v2084_v62 = vpop.permute.xlu1 %2083 }
 0x160   :  { %v2086_v0 = vunpack.i.h.bf16 %v2084_v62  ;;  %v2085_v1 = vunpack.i.l.bf16 %v2084_v62 }
 0x162   :  { %v1998_v4 = vpack.c.bf16 %v2086_v0, %v2085_v1 }
 0x163   :  { %v578_v6 = vpop.permute.xlu1 %577 }
 0x167   :  { %v2089_v7 = vpop.permute.xlu1 %2088 }
 0x168   :  { %v2091_v8 = vunpack.i.h.bf16 %v2089_v7  ;;  %v2090_v9 = vunpack.i.l.bf16 %v2089_v7 }
 0x16a   :  { %v2008_v13 = vpack.c.bf16 %v2091_v8, %v2090_v9 }
 0x16b   :  { %v855_v18 = vpop.permute.xlu1 %854 }
 0x16f   :  { %v857_v19 = vpop.permute.xlu1 %856 }
 0x1c8   :  { %v1848_v40 = vpop.f32.mrb[0].mxu1 }
 0x1c9   :  { %v395_v41 = vadd.f32 %v1848_v40, %v2317_v38  ;;  %v389_v42 = vpop.f32.mrb[1].mxu1 }
 0x1ca   :  { %v390_v43 = vadd.f32 %v389_v42, %v2322_v39 }
 0x1cb   :  { %v400_v44 = vmul.f32 1.442695, %v395_v41 }
 0x1cc   :  { %v398_v45 = vmul.f32 1.442695, %v390_v43 }
 0x1ce   :  { %2112 = vpow2.f32 %v398_v45 }
 0x1cf   :  { %2114 = vpow2.f32 %v400_v44 }
 0x1d8   :  { %v2113_v46 = vpop.eup %2112 }
 0x1d9   :  { %v403_v47 = vsel %vm402_vm3, %v2113_v46, 0.0  ;;  %v2115_v48 = vpop.eup %2114 }
 0x1da   :  { %404 = vadd.xlane.f32.xlu0 %v403_v47  ;;  %v406_v49 = vsel %vm402_vm3, %v2115_v48, 0.0 }
 0x1de   :  { %407 = vadd.xlane.f32.xlu0 %v406_v49 }
 0x1f4   :  { %579 = vrot.lane.b32.xlu0 %v2302_v37, %s2180_s10 }
 0x267   :  { %v405_v59 = vpop.xlane.xlu0 %404 }
 0x268   :  { %2116 = vrcp.f32 %v405_v59 }
 0x26b   :  { %v408_v60 = vpop.xlane.xlu0 %407 }
 0x26c   :  { %2118 = vrcp.f32 %v408_v60 }
 0x26f   :  { %v580_v14 = vpop.permute.xlu0 %579 }
 0x272   :  { %v2117_v61 = vpop.eup %2116 }
 0x273   :  { %v411_v63 = vmul.f32 %v2117_v61, %v2113_v46 }
 0x275   :  { %1853 = vmatprep.mubr.msk.f32.mxu0 %vm402_vm3, %v411_v63 }
 0x276   :  { %v2119_v2 = vpop.eup %2118 }
 0x277   :  { %v412_v3 = vmul.f32 %v2119_v2, %v2115_v48 }
 0x279   :  { %1854 = vmatmul.mubr.msk.f32.vlgmr.msra.gmra.mrb[6].mxu0 %vm402_vm3, %v412_v3 }
 0x27a   :  { %1857 = vmatpush3.msra.mxu0 %v34_v58  ;;  %v35_v58 = vld [vmem:[%s2523_s2 + $0x68] sm:$0xff] }
 0x27b   :  { %2000 = vmatprep.subr.msk.bf16.mxu0 %vm2276_vm2, %v1998_v4 }
 0x34c   :  { %v1855_v10 = vpop.f32.mrb[6].mxu0 }
 0x34d   :  { %v485_v11 = vpop.f32.mrb[7].mxu0 }
 0x34e   :  { %1858 = vmatprep.mubr.msk.f32.mxu0 %vm310_vm1, %v485_v11 }
 0x34f   :  { %1859 = vmatmul.mubr.msk.f32.vlgmr.msra.gmra.mrb[8].mxu0 %vm310_vm1, %v1855_v10 }
 0x350   :  { %2003 = vmatpush3.bf16.xpose.msk.msra.mxu0 %vm2276_vm2, %v1998_v4  ;;  %1865 = vmatprep.mubr.msk.f32.mxu0 %vm310_vm1, %v578_v6 }
 0x351   :  { %2010 = vmatprep.subr.msk.bf16.mxu0 %vm2276_vm2, %v2008_v13 }
 0x357   :  { %1866 = vmatmul.mubr.msk.f32.vlgmr.msra.gmra.mrb[10].mxu0 %vm310_vm1, %v580_v14 }
 0x358   :  { %2013 = vmatpush3.bf16.xpose.msk.msra.mxu0 %vm2276_vm2, %v2008_v13  ;;  %1884 = vmatprep.mubr.msk.f32.mxu0 %vm310_vm1, %v855_v18 }
 0x35f   :  { %1885 = vmatmul.mubr.msk.f32.vlgmr.msra.gmra.mrb[12].mxu0 %vm310_vm1, %v857_v19 }
 0x422   :  { %v2353_v20 = vpop.f32.mrb[8].mxu0 }
 0x423   :  { %v2355_v23 = vpop.f32.mrb[9].mxu0 }
 0x42a   :  { %v1867_v24 = vpop.f32.mrb[10].mxu0 }
 0x42b   :  { %v665_v25 = vadd.f32 %v1867_v24, %v2317_v38  ;;  %v659_v26 = vpop.f32.mrb[11].mxu0 }
 0x42c   :  { %v660_v27 = vadd.f32 %v659_v26, %v2322_v39 }
 0x42d   :  { %v670_v30 = vmul.f32 1.442695, %v665_v25 }
 0x42e   :  { %v668_v31 = vmul.f32 1.442695, %v660_v27 }
 0x42f   :  { %2120 = vpow2.f32 %v670_v30 }
 0x430   :  { %2122 = vpow2.f32 %v668_v31 }
 0x432   :  { %v1886_v32 = vpop.f32.mrb[12].mxu0 }
 0x433   :  { %v936_v33 = vpop.f32.mrb[13].mxu0  ;;  %v942_v41 = vadd.f32 %v1886_v32, %v2317_v38 }
 0x434   :  { %v937_v43 = vadd.f32 %v936_v33, %v2322_v39 }
 0x435   :  { %v947_v42 = vmul.f32 1.442695, %v942_v41 }
 0x436   :  { %v945_v44 = vmul.f32 1.442695, %v937_v43 }
 0x437   :  { %2124 = vpow2.f32 %v947_v42 }
 0x438   :  { %2126 = vpow2.f32 %v945_v44  ;;  %v37_v44 = vld [vmem:[%s2523_s2 + $0x78] sm:$0xff] }
 0x439   :  { %v2121_v34 = vpop.eup %2120 }
 0x43a   :  { %v2123_v35 = vpop.eup %2122  ;;  %v675_v36 = vsel %vm402_vm3, %v2121_v34, 0.0 }
 0x43b   :  { %676 = vadd.xlane.f32.xlu0 %v675_v36  ;;  %v672_v40 = vsel %vm402_vm3, %v2123_v35, 0.0 }
 0x43c   :  { %673 = vadd.xlane.f32.xlu1 %v672_v40 }
 0x441   :  { %v2125_v45 = vpop.eup %2124 }
 0x442   :  { %v952_v46 = vsel %vm402_vm3, %v2125_v45, 0.0  ;;  %v2127_v47 = vpop.eup %2126 }
 0x44d   :  { %2093 = vrot.lane.b32.xlu1 %v2330_v57, %s2180_s10 }
 0x451   :  { %2098 = vrot.lane.b32.xlu0 %v2280_v29, %s2182_s25  ;;  %1129 = vrot.lane.b32.xlu1 %v2267_v22, %s2182_s25  ;;  %v949_v29 = vsel %vm402_vm3, %v2127_v47, 0.0 }
 0x455   :  { %1131 = vrot.lane.b32.xlu1 %v2302_v37, %s2182_s25 }
 0x470   :  { %953 = vadd.xlane.f32.xlu0 %v952_v46 }
 0x479   :  { %950 = vadd.xlane.f32.xlu1 %v949_v29  ;;  %v306_v29 = vsub.s32 3, %v2255_v15 }
 0x486   :  { %2103 = vrot.lane.b32.xlu0 %v2330_v57, %s2181_s19  ;;  %s1672_s19 = sshll.u32 %s2183_s18, 4  ;;  %s1673_s19 = int_to_ptr.vmem [resolvable:$true] %s1672_s19 }
 0x487   :  { %p2161_p1 = scmp.lt.s32.totalorder %s1673_s19, %s1673_s19 }
 0x4c8   :  { %v677_v22 = vpop.xlane.xlu0 %676 }
 0x4c9   :  { %2128 = vrcp.f32 %v677_v22  ;;  %v674_v37 = vpop.xlane.xlu1 %673  ;;  %v307_v22 = vrot.slane %v2261_v17, %v306_v29 }
 0x4ca   :  { %2130 = vrcp.f32 %v674_v37 }
 0x4cb   :  { %v309_v37 = vadd.f32 %v307_v22, %v2245_v12 }
 0x4cc   :  { %v2099_v48 = vpop.permute.xlu0 %2098 }
 0x4cd   :  { %v2101_v49 = vunpack.i.h.bf16 %v2099_v48  ;;  %v2100_v50 = vunpack.i.l.bf16 %v2099_v48  ;;  %v2094_v51 = vpop.permute.xlu1 %2093  ;;  %v308_v48 = vadd.f32 %v307_v22, %v2226_v5  ;;  %v52_v22 = vld [vmem:[%s2523_s2 + $0xf0] sm:$0xff] }
 0x4ce   :  { %v2096_v52 = vunpack.i.h.bf16 %v2094_v51  ;;  %v2095_v53 = vunpack.i.l.bf16 %v2094_v51 }
 0x4cf   :  { %v2018_v54 = vpack.c.bf16 %v2101_v49, %v2100_v50  ;;  %v576_v49 = vadd.f32 %v2353_v20, %v309_v37  ;;  %v575_v50 = vadd.f32 %v2355_v23, %v308_v48  ;;  %v53_v37 = vld [vmem:[%s2523_s2 + $0xf8] sm:$0xff] }
 0x4d0   :  { %v2004_v55 = vpack.c.bf16 %v2096_v52, %v2095_v53  ;;  %v2056_v48 = vpack.c.bf16 %v53_v37, %v52_v22 }
 0x4d1   :  { %2020 = vmatprep.subr.msk.bf16.mxu0 %vm2276_vm2, %v2018_v54  ;;  %v1130_v56 = vpop.permute.xlu1 %1129 }
 0x4d2   :  { %2005 = vmatprep.subr.bf16.mxu1 %v2004_v55  ;;  %2023 = vmatpush3.bf16.xpose.msk.msra.mxu0 %vm2276_vm2, %v2018_v54 }
 0x4d3   :  { %v2129_v59 = vpop.eup %2128  ;;  %1903 = vmatprep.mubr.msk.f32.mxu0 %vm310_vm1, %v1130_v56  ;;  %2007 = vmatpush3.bf16.msra.mxu1 %v2004_v55 }
 0x4d4   :  { %v2131_v60 = vpop.eup %2130  ;;  %1875 = vmatprep.subr.mxu1 %v35_v58  ;;  %v681_v62 = vmul.f32 %v2129_v59, %v2121_v34 }
 0x4d5   :  { %v680_v61 = vmul.f32 %v2131_v60, %v2123_v35  ;;  %v1132_v63 = vpop.permute.xlu1 %1131 }
 0x4d7   :  { %1872 = vmatprep.mubr.msk.f32.mxu1 %vm402_vm3, %v680_v61 }
 0x4d8   :  { %1873 = vmatmul.mubr.msk.f32.vlgmr.msra.gmra.mrb[2].mxu1 %vm402_vm3, %v681_v62 }
 0x4d9   :  { %1904 = vmatmul.mubr.msk.f32.vlgmr.msra.gmra.mrb[14].mxu0 %vm310_vm1, %v1132_v63  ;;  %1876 = vmatpush3.msra.mxu1 %v35_v58 }
 0x4fd   :  { %v954_v0 = vpop.xlane.xlu0 %953 }
 0x501   :  { %v2104_v1 = vpop.permute.xlu0 %2103 }
 0x502   :  { %v2106_v28 = vunpack.i.h.bf16 %v2104_v1  ;;  %v2105_v2 = vunpack.i.l.bf16 %v2104_v1  ;;  %v39_v1 = vld [vmem:[%s2523_s2 + $0x88] sm:$0xff] }
 0x504   :  { %v2014_v3 = vpack.c.bf16 %v2106_v28, %v2105_v2  ;;  %v40_v2 = vld [vmem:[%s2523_s2 + $0x90] sm:$0xff] }
 0x506   :  { %2015 = vmatprep.subr.bf16.mxu1 %v2014_v3  ;;  %v951_v4 = vpop.xlane.xlu1 %950 }
 0x507   :  { %2132 = vrcp.f32 %v951_v4 }
 0x508   :  { %2134 = vrcp.f32 %v954_v0  ;;  %v38_v0 = vld [vmem:[%s2523_s2 + $0x80] sm:$0xff] }
 0x509   :  { %v2028_v28 = vpack.c.bf16 %v39_v1, %v38_v0 }
 0x50b   :  { %2029 = vmatprep.subr.bf16.mxu0 %v2028_v28 }
 0x50c   :  { %2031 = vmatpush3.bf16.msra.mxu0 %v2028_v28 }
 0x511   :  { %v2133_v6 = vpop.eup %2132 }
 0x512   :  { %v2135_v10 = vpop.eup %2134  ;;  %v957_v14 = vmul.f32 %v2133_v6, %v2127_v47  ;;  %v42_v6 = vld [vmem:[%s2523_s2 + $0xa0] sm:$0xff] }
 0x513   :  { %v958_v24 = vmul.f32 %v2135_v10, %v2125_v45 }
 0x5ab   :  { %v1874_v7 = vpop.f32.mrb[2].mxu1 }
 0x5ac   :  { %v762_v8 = vpop.f32.mrb[3].mxu1  ;;  %v1905_v9 = vpop.f32.mrb[14].mxu0 }
 0x5ad   :  { %v1217_v11 = vadd.f32 %v1905_v9, %v2317_v38  ;;  %1877 = vmatprep.mubr.msk.f32.mxu1 %vm310_vm1, %v762_v8  ;;  %v1211_v13 = vpop.f32.mrb[15].mxu0 }
 0x5ae   :  { %v1212_v18 = vadd.f32 %v1211_v13, %v2322_v39  ;;  %1878 = vmatmul.mubr.msk.f32.vlgmr.msra.gmra.mrb[4].mxu1 %vm310_vm1, %v1874_v7  ;;  %v36_v39 = vld [vmem:[%s2523_s2 + $0x70] sm:$0xff]  ;;  %v43_v7 = vld [vmem:[%s2523_s2 + $0xa8] sm:$0xff] }
 0x5af   :  { %v1222_v19 = vmul.f32 1.442695, %v1217_v11  ;;  %2017 = vmatpush3.bf16.msra.mxu1 %v2014_v3  ;;  %1891 = vmatprep.mubr.msk.f32.mxu1 %vm402_vm3, %v957_v14  ;;  %v41_v3 = vld [vmem:[%s2523_s2 + $0x98] sm:$0xff]  ;;  %v2036_v8 = vpack.c.bf16 %v43_v7, %v42_v6 }
 0x5b0   :  { %v1220_v25 = vmul.f32 1.442695, %v1212_v18  ;;  %1894 = vmatprep.subr.mxu1 %v36_v39  ;;  %v2032_v4 = vpack.c.bf16 %v41_v3, %v40_v2 }
 0x5b1   :  { %2136 = vpow2.f32 %v1222_v19  ;;  %v1433_v19 = vsub.s32 4, %v2255_v15 }
 0x5b2   :  { %1892 = vmatmul.mubr.msk.f32.vlgmr.msra.gmra.mrb[6].mxu1 %vm402_vm3, %v958_v24  ;;  %2138 = vpow2.f32 %v1220_v25  ;;  %2033 = vmatprep.subr.bf16.mxu0 %v2032_v4  ;;  %v1439_v24 = vsub.s32 5, %v2255_v15 }
 0x5b3   :  { %1895 = vmatpush3.msra.mxu1 %v36_v39  ;;  %2035 = vmatpush3.bf16.msra.mxu0 %v2032_v4  ;;  %v1434_v25 = vrot.slane %v2261_v17, %v1433_v19 }
 0x5bb   :  { %v2137_v26 = vpop.eup %2136 }
 0x5bc   :  { %v1227_v38 = vsel %vm402_vm3, %v2137_v26, 0.0  ;;  %v2139_v27 = vpop.eup %2138 }
 0x5bd   :  { %1228 = vadd.xlane.f32.xlu1 %v1227_v38  ;;  %v1224_v30 = vsel %vm402_vm3, %v2139_v27, 0.0 }
 0x5c1   :  { %1225 = vadd.xlane.f32.xlu1 %v1224_v30 }
 0x5d2   :  { %2108 = vrot.lane.b32.xlu1 %v2330_v57, %s2182_s25 }
 0x64a   :  { %v1229_v31 = vpop.xlane.xlu1 %1228 }
 0x64e   :  { %v1226_v32 = vpop.xlane.xlu1 %1225 }
 0x64f   :  { %2140 = vrcp.f32 %v1226_v32 }
 0x650   :  { %2142 = vrcp.f32 %v1229_v31 }
 0x652   :  { %v2109_v33 = vpop.permute.xlu1 %2108 }
 0x653   :  { %v2111_v34 = vunpack.i.h.bf16 %v2109_v33  ;;  %v2110_v35 = vunpack.i.l.bf16 %v2109_v33 }
 0x655   :  { %v2024_v36 = vpack.c.bf16 %v2111_v34, %v2110_v35  ;;  %v44_v35 = vld [vmem:[%s2523_s2 + $0xb0] sm:$0xff] }
 0x657   :  { %2025 = vmatprep.subr.bf16.mxu1 %v2024_v36 }
 0x659   :  { %v2141_v40 = vpop.eup %2140 }
 0x65a   :  { %v2143_v43 = vpop.eup %2142  ;;  %v1232_v57 = vmul.f32 %v2141_v40, %v2139_v27  ;;  %v1440_v27 = vrot.slane %v2261_v17, %v1439_v24 }
 0x65b   :  { %v1233_v45 = vmul.f32 %v2143_v43, %v2137_v26 }
 0x685   :  { %v1893_v41 = vpop.f32.mrb[6].mxu1 }
 0x686   :  { %v1037_v42 = vpop.f32.mrb[7].mxu1 }
 0x687   :  { %1896 = vmatprep.mubr.msk.f32.mxu1 %vm310_vm1, %v1037_v42  ;;  %v47_v42 = vld [vmem:[%s2523_s2 + $0xc8] sm:$0xff] }
 0x688   :  { %1897 = vmatmul.mubr.msk.f32.vlgmr.msra.gmra.mrb[4].mxu1 %vm310_vm1, %v1893_v41  ;;  %v46_v41 = vld [vmem:[%s2523_s2 + $0xc0] sm:$0xff] }
 0x689   :  { %2027 = vmatpush3.bf16.msra.mxu1 %v2024_v36  ;;  %1910 = vmatprep.mubr.msk.f32.mxu1 %vm402_vm3, %v1232_v57  ;;  %v45_v36 = vld [vmem:[%s2523_s2 + $0xb8] sm:$0xff]  ;;  %v2044_v43 = vpack.c.bf16 %v47_v42, %v46_v41  ;;  %v48_v57 = vld [vmem:[%s2523_s2 + $0xd0] sm:$0xff] }
 0x68a   :  { %1913 = vmatprep.subr.mxu1 %v37_v44  ;;  %v2040_v40 = vpack.c.bf16 %v45_v36, %v44_v35 }
 0x68c   :  { %1911 = vmatmul.mubr.msk.f32.vlgmr.msra.gmra.mrb[8].mxu1 %vm402_vm3, %v1233_v45 }
 0x68d   :  { %1914 = vmatpush3.msra.mxu1 %v37_v44  ;;  %v49_v44 = vld [vmem:[%s2523_s2 + $0xd8] sm:$0xff] }
 0x68e   :  { %2037 = vmatprep.subr.bf16.mxu1 %v2036_v8  ;;  %v2048_v45 = vpack.c.bf16 %v49_v44, %v48_v57 }
 0x75f   :  { %v1912_v46 = vpop.f32.mrb[8].mxu1 }
 0x760   :  { %v1312_v47 = vpop.f32.mrb[9].mxu1 }
 0x761   :  { %1915 = vmatprep.mubr.msk.f32.mxu1 %vm310_vm1, %v1312_v47  ;;  %v51_v47 = vld [vmem:[%s2523_s2 + $0xe8] sm:$0xff] }
 0x762   :  { %1916 = vmatmul.mubr.msk.f32.vlgmr.msra.gmra.mrb[4].mxu1 %vm310_vm1, %v1912_v46  ;;  %v50_v46 = vld [vmem:[%s2523_s2 + $0xe0] sm:$0xff] }
 0x763   :  { %2039 = vmatpush3.bf16.msra.mxu1 %v2036_v8  ;;  %v2052_v29 = vpack.c.bf16 %v51_v47, %v50_v46  ;;  %v59_v47 = vld [vmem:[%s2524_s3 + $0x8] sm:$0xff]  ;;  %s2156_s3 = scalar_lea.vmem %s1673_s19, 256 }
 0x764   :  { %2041 = vmatprep.subr.bf16.mxu1 %v2040_v40  ;;  %p2157_p0 = scmp.ne.s32.totalorder %s1673_s19, %s2156_s3  ;;  %p2162_p2 = scmp.lt.s32.totalorder %s2156_s3, %s2156_s3 }
 0x766   :  { %p2163_p3 = por %p2162_p2, %p2161_p1 }
 0x767   :  { %2043 = vmatpush3.bf16.msra.mxu1 %v2040_v40 }
 0x768   :  { %2045 = vmatprep.subr.bf16.mxu1 %v2044_v43  ;;  %p2164_p4 = pnand %p2163_p3, %p2157_p0 }
 0x76b   :  { %2047 = vmatpush3.bf16.msra.mxu1 %v2044_v43 }
 0x76c   :  { %2049 = vmatprep.subr.bf16.mxu1 %v2048_v45 }
 0x76f   :  { %2051 = vmatpush3.bf16.msra.mxu1 %v2048_v45 }
 0x770   :  { %2053 = vmatprep.subr.bf16.mxu1 %v2052_v29 }
 0x773   :  { %2055 = vmatpush3.bf16.msra.mxu1 %v2052_v29  ;;  %v1656_v29 = vrot.slane %v59_v47, %v62_v16 }
 0x774   :  { %2057 = vmatprep.subr.bf16.mxu1 %v2056_v48 }
 0x777   :  { %2059 = vmatpush3.bf16.msra.mxu1 %v2056_v48  ;;  %v1662_v48 = vrot.slane %v59_v47, %v148_v21 }
 0x835   :  { %v1917_v51 = vpop.f32.mrb[4].mxu1 }
 0x836   :  { %v2069_v52 = vadd.f32 %v1917_v51, %v576_v49  ;;  %v1393_v53 = vpop.f32.mrb[5].mxu1  ;;  %v54_v49 = vld [vmem:[%s2523_s2 + $0x100] sm:$0xff] }
 0x837   :  { %v2071_v54 = vadd.f32 %v1393_v53, %v575_v50  ;;  %v55_v50 = vld [vmem:[%s2523_s2 + $0x108] sm:$0xff]  ;;  %v57_v53 = vld [vmem:[%s2523_s2 + $0x118] sm:$0xff] }
 0x838   :  { %v1407_v55 = vsel %vm64_vm0, %v2069_v52, 0.0  ;;  %v2060_v51 = vpack.c.bf16 %v55_v50, %v54_v49 }
 0x839   :  { %1408 = vadd.xlane.f32.xlu1 %v1407_v55  ;;  %v1404_v56 = vsel %vm64_vm0, %v2071_v54, 0.0  ;;  %v1445_v55 = vsub.s32 6, %v2255_v15 }
 0x83a   :  { %1405 = vadd.xlane.f32.xlu0 %v1404_v56  ;;  %2061 = vmatprep.subr.bf16.mxu1 %v2060_v51 }
 0x83b   :  { %2063 = vmatpush3.bf16.msra.mxu1 %v2060_v51  ;;  %v1446_v56 = vrot.slane %v2261_v17, %v1445_v55 }
 0x8c6   :  { %v1409_v58 = vpop.xlane.xlu1 %1408 }
 0x8c7   :  { %v1412_v59 = vmul.f32 0.03125, %v1409_v58  ;;  %v1406_v60 = vpop.xlane.xlu0 %1405 }
 0x8c8   :  { %v1411_v12 = vmul.f32 0.03125, %v1406_v60 }
 0x8c9   :  { %v1414_v61 = vsub.f32 %v2069_v52, %v1412_v59  ;;  %v56_v52 = vld [vmem:[%s2523_s2 + $0x110] sm:$0xff] }
 0x8ca   :  { %v1413_v5 = vsub.f32 %v2071_v54, %v1411_v12  ;;  %v2064_v54 = vpack.c.bf16 %v57_v53, %v56_v52 }
 0x8cb   :  { %v1416_v23 = vmul.f32 %v1414_v61, %v1414_v61 }
 0x8cc   :  { %v1415_v62 = vmul.f32 %v1413_v5, %v1413_v5  ;;  %2065 = vmatprep.subr.bf16.mxu1 %v2064_v54 }
 0x8cd   :  { %v1420_v63 = vsel %vm64_vm0, %v1416_v23, 0.0  ;;  %2067 = vmatpush3.bf16.msra.mxu1 %v2064_v54 }
 0x8ce   :  { %v1417_v20 = vsel %vm64_vm0, %v1415_v62, 0.0 }
 0x8cf   :  { %1418 = vadd.xlane.f32.xlu0 %v1417_v20 }
 0x8d3   :  { %1421 = vadd.xlane.f32.xlu0 %v1420_v63 }
 0x95c   :  { %v1419_v9 = vpop.xlane.xlu0 %1418 }
 0x95d   :  { %v1423_v10 = vmul.f32 0.03125, %v1419_v9 }
 0x95f   :  { %v1425_v11 = vadd.f32 1e-12, %v1423_v10 }
 0x960   :  { %v1422_v13 = vpop.xlane.xlu0 %1421 }
 0x961   :  { %2144 = vrsqrt.f32 %v1425_v11  ;;  %v1424_v14 = vmul.f32 0.03125, %v1422_v13  ;;  %v1548_v13 = vsub.s32 7, %v2255_v15 }
 0x963   :  { %v1426_v18 = vadd.f32 1e-12, %v1424_v14  ;;  %v1549_v14 = vrot.slane %v2261_v17, %v1548_v13 }
 0x965   :  { %2146 = vrsqrt.f32 %v1426_v18 }
 0x96b   :  { %v2145_v26 = vpop.eup %2144 }
 0x96c   :  { %v1429_v38 = vmul.f32 %v2145_v26, %v1413_v5 }
 0x96e   :  { %v1435_v30 = vmul.f32 %v1434_v25, %v1429_v38 }
 0x96f   :  { %v2147_v39 = vpop.eup %2146 }
 0x970   :  { %v1430_v31 = vmul.f32 %v2147_v39, %v1414_v61  ;;  %v2440_v32 = vadd.f32 %v1440_v27, %v1435_v30 }
 0x972   :  { %v1436_v33 = vmul.f32 %v1434_v25, %v1430_v31  ;;  %1926 = vmatprep.mubr.msk.f32.mxu0 %vm64_vm0, %v2440_v32 }
 0x974   :  { %v2444_v34 = vadd.f32 %v1440_v27, %v1436_v33 }
 0x976   :  { %1927 = vmatmul.mubr.msk.f32.vlgmr.msra.gmra.mrb[16].mxu0 %vm64_vm0, %v2444_v34 }
 0xa49   :  { %v1928_v58 = vpop.f32.mrb[16].mxu0 }
 0xa4a   :  { %v1525_v59 = vadd.f32 %v1928_v58, %v1446_v56  ;;  %v1519_v60 = vpop.f32.mrb[17].mxu0 }
 0xa4b   :  { %v1520_v12 = vadd.f32 %v1519_v60, %v1446_v56 }
 0xa4c   :  { %v1531_v61 = vmul.f32 0.044715, %v1525_v59  ;;  %v1529_v9 = vmul.f32 0.5, %v1525_v59 }
 0xa4d   :  { %v1530_v5 = vmul.f32 0.044715, %v1520_v12  ;;  %v1528_v7 = vmul.f32 0.5, %v1520_v12 }
 0xa4e   :  { %v1533_v62 = vmul.f32 %v1531_v61, %v1525_v59 }
 0xa4f   :  { %v1532_v20 = vmul.f32 %v1530_v5, %v1520_v12 }
 0xa50   :  { %v1535_v23 = vmul.f32 %v1533_v62, %v1525_v59 }
 0xa51   :  { %v1534_v63 = vmul.f32 %v1532_v20, %v1520_v12 }
 0xa52   :  { %v1537_v0 = vadd.f32 %v1535_v23, %v1525_v59 }
 0xa53   :  { %v1536_v1 = vadd.f32 %v1534_v63, %v1520_v12 }
 0xa54   :  { %v1539_v28 = vmul.f32 0.7978846, %v1537_v0 }
 0xa55   :  { %v1538_v2 = vmul.f32 0.7978846, %v1536_v1 }
 0xa56   :  { %2148 = vtanh.f32 %v1539_v28 }
 0xa57   :  { %2150 = vtanh.f32 %v1538_v2 }
 0xa60   :  { %v2149_v3 = vpop.eup %2148 }
 0xa61   :  { %v2151_v4 = vpop.eup %2150  ;;  %v1543_v6 = vadd.f32 1.0, %v2149_v3 }
 0xa62   :  { %v1542_v8 = vadd.f32 1.0, %v2151_v4 }
 0xa63   :  { %v1545_v11 = vmul.f32 %v1543_v6, %v1529_v9 }
 0xa64   :  { %v1544_v10 = vmul.f32 %v1542_v8, %v1528_v7 }
 0xa66   :  { %1961 = vmatprep.mubr.f32.mxu1 %v1544_v10 }
 0xa67   :  { %1962 = vmatmul.mubr.f32.vlgmr.msra.gmra.mrb[10].mxu1 %v1545_v11 }
 0xb3a   :  { %v1963_v18 = vpop.f32.mrb[10].mxu1 }
 0xb3b   :  { %v1622_v19 = vadd.f32 %v1963_v18, %v1549_v14  ;;  %v1616_v24 = vpop.f32.mrb[11].mxu1 }
 0xb3c   :  { %v1617_v25 = vadd.f32 %v1616_v24, %v1549_v14 }
 0xb3d   :  { %v1626_v26 = vadd.f32 %v1622_v19, %v2444_v34 }
 0xb3e   :  { %v1625_v38 = vadd.f32 %v1617_v25, %v2440_v32 }
 0xb3f   :  { %v1630_v27 = vsel %vm64_vm0, %v1626_v26, 0.0 }
 0xb40   :  { %1631 = vadd.xlane.f32.xlu1 %v1630_v27  ;;  %v1627_v30 = vsel %vm64_vm0, %v1625_v38, 0.0 }
 0xb41   :  { %1628 = vadd.xlane.f32.xlu0 %v1627_v30 }
 0xbcd   :  { %v1632_v39 = vpop.xlane.xlu1 %1631 }
 0xbce   :  { %v1634_v31 = vmul.f32 0.03125, %v1632_v39  ;;  %v1629_v33 = vpop.xlane.xlu0 %1628 }
 0xbcf   :  { %v1633_v35 = vmul.f32 0.03125, %v1629_v33 }
 0xbd0   :  { %v1636_v36 = vsub.f32 %v1626_v26, %v1634_v31 }
 0xbd1   :  { %v1635_v17 = vsub.f32 %v1625_v38, %v1633_v35 }
 0xbd2   :  { %v1638_v40 = vmul.f32 %v1636_v36, %v1636_v36 }
 0xbd3   :  { %v1637_v41 = vmul.f32 %v1635_v17, %v1635_v17 }
 0xbd4   :  { %v1642_v42 = vsel %vm64_vm0, %v1638_v40, 0.0 }
 0xbd5   :  { %1643 = vadd.xlane.f32.xlu1 %v1642_v42  ;;  %v1639_v34 = vsel %vm64_vm0, %v1637_v41, 0.0 }
 0xbd6   :  { %1640 = vadd.xlane.f32.xlu0 %v1639_v34 }
 0xc62   :  { %v1644_v32 = vpop.xlane.xlu1 %1643 }
 0xc63   :  { %v1646_v43 = vmul.f32 0.03125, %v1644_v32  ;;  %v1641_v57 = vpop.xlane.xlu0 %1640 }
 0xc64   :  { %v1645_v44 = vmul.f32 0.03125, %v1641_v57 }
 0xc65   :  { %v1648_v45 = vadd.f32 1e-12, %v1646_v43 }
 0xc66   :  { %v1647_v46 = vadd.f32 1e-12, %v1645_v44 }
 0xc67   :  { %2152 = vrsqrt.f32 %v1648_v45 }
 0xc68   :  { %2154 = vrsqrt.f32 %v1647_v46 }
 0xc71   :  { %v2153_v22 = vpop.eup %2152 }
 0xc72   :  { %v2155_v37 = vpop.eup %2154  ;;  %v1652_v49 = vmul.f32 %v2153_v22, %v1636_v36 }
 0xc73   :  { %v1651_v50 = vmul.f32 %v2155_v37, %v1635_v17 }
 0xc74   :  { %v1658_v51 = vmul.f32 %v1656_v29, %v1652_v49 }
 0xc75   :  { %v1657_v52 = vmul.f32 %v1656_v29, %v1651_v50 }
 0xc76   :  { %v1664_v53 = vadd.f32 %v1662_v48, %v1658_v51 }
 0xc77   :  { %v1663_v54 = vadd.f32 %v1662_v48, %v1657_v52 }
 0xc78   :  { %1666 = vst.msk [vmem:[#allocation2 + $0x8] sm:$0xff] %vm64_vm0, %v1664_v53 }
 0xc79   :  { %1665 = vst.msk [vmem:[#allocation2] sm:$0xff] %vm64_vm0, %v1663_v54 }
 0xc7a   :  { %2167 = shalt.err (!%p2164_p4)
}
 0xc7b   :  { %s2168_s22 = scalar_lea.hbm %s2525_s4, 256 }
 0xc7c   :  { %p2169_p5 = scmp.ne.s32.totalorder %s2525_s4, %s2168_s22  ;;  %p2172_p6 = scmp.lt.u32.totalorder %s2168_s22, %s2525_s4 }
 0xc7e   :  { %p2174_p7 = pnand %p2172_p6, %p2169_p5 }
 0xc80   :  { %2177 = shalt.err (!%p2174_p7)
}
 0xc81   :  { %s2184_s26 = smov 128   ;;  %s2185_s27 = smov 8  }
 0xc82   :  { %1678 = dma.vmem_to_hbm [thread:$0]  %s1673_s19, 256, %s2525_s4, [#allocation3], %s2184_s26, %s2184_s26, %s2185_s27  }
 0xc83   :  { %2178 = dma.done.wait [#allocation3], 256  }
 0xc84   :  { %2179 = vsyncadd [#allocation3], 4294967040 }
 0xc85   :  { %1682 = vsyncpa [#allocation3], 1 }

</bundles_post_ra>
